<compile_context>
chip_gen: v7x
topology: tpu7x:2x2x1
jax: 0.10.0
libtpu: 0.0.40
codegen_flags: <defaults>
</compile_context>

<pallas_src>
import functools

import jax
import jax.numpy as jnp
from jax.experimental import pallas as pl
from jax.experimental.pallas import tpu as pltpu

_LANES = 128
_SUBLANES = 8
_MAX_TILE_ROWS = 8192   # 8192 * 128 * 4B = 4 MiB per f32 input block
_CHUNK_ROWS = 1024      # sub-chunk for the in-kernel cast/mul/accumulate loop
_NUM_CORE_SPLITS = 2    # split the reduction so both v7x TCs stream HBM


def _round_up(x, m):
    return ((x + m - 1) // m) * m


def _tversky_sums_kernel(pred_ref, true_ref, tp_ref, s1_ref, s2_ref, *,
                         rows_total, tile_r, chunk_r, kt_half, need_mask):
    """Accumulate per-(batch, core-split) sum(m1*m2), sum(m1), sum(m2)."""
    k = pl.program_id(2)

    # Fresh accumulators at the start of each (batch, split) reduction.
    @pl.when(k == 0)
    def _():
        tp_ref[...] = jnp.zeros_like(tp_ref)
        s1_ref[...] = jnp.zeros_like(s1_ref)
        s2_ref[...] = jnp.zeros_like(s2_ref)

    # Masking state (only generated when the tiling does not exactly cover
    # `rows_total`, i.e. partial last tile / empty core-split tiles).
    if need_mask:
        gk = pl.program_id(1) * kt_half + k        # global row-tile index
        rows_left_in_tile = rows_total - gk * tile_r
        row_ids = jax.lax.broadcasted_iota(jnp.int32, (chunk_r, _LANES), 0)

    g = chunk_r // _SUBLANES

    def accumulate(off):
        # Per-sub-chunk loads + cast keep live temporaries small.
        m2 = pred_ref[0, pl.ds(off, chunk_r), :].astype(jnp.float32)  # y_pred
        m1 = true_ref[0, pl.ds(off, chunk_r), :].astype(jnp.float32)  # y_true
        if need_mask:
            valid = row_ids < (rows_left_in_tile - off)
            m1 = jnp.where(valid, m1, 0.0)   # mask BEFORE any arithmetic
            m2 = jnp.where(valid, m2, 0.0)
        # Fold (chunk_r,128) -> (g,8,128) on (8,128)-tile boundaries and reduce
        # the leading axis: pure vector adds into lane-dense accumulators.
        tp_ref[0] += jnp.sum((m1 * m2).reshape(g, _SUBLANES, _LANES), axis=0)
        s1_ref[0] += jnp.sum(m1.reshape(g, _SUBLANES, _LANES), axis=0)
        s2_ref[0] += jnp.sum(m2.reshape(g, _SUBLANES, _LANES), axis=0)

    n_chunks = tile_r // chunk_r
    if n_chunks == 1:
        accumulate(0)
    else:
        def body(i, carry):
            accumulate(pl.multiple_of(i * chunk_r, chunk_r))
            return carry

        jax.lax.fori_loop(0, n_chunks, body, 0, unroll=True)


def _tversky_sums(pred2d, true2d):
    """pred2d, true2d: (B, N) arrays (any real dtype; cast to f32 in-kernel).

    Returns per-batch f32 (tp, s_true, s_pred) = (sum(m1*m2), sum(m1), sum(m2)),
    each of shape (B,).
    """
    B, N = pred2d.shape

    # Lane-dense (B, rows, 128) view. Free bitcast when N % 128 == 0 (the
    # common case). Row-count misalignment (rows % 8, rows % tile_r, empty
    # core-split tiles) is handled purely by in-kernel masking -- no padding.
    lane_pad = (-N) % _LANES
    if lane_pad:
        # TODO(synk): N % 128 != 0 still pads (full HBM copy); a copy-free path
        # would need a non-reshaped 2-D layout with per-lane masking.
        pred2d = jnp.pad(pred2d, ((0, 0), (0, lane_pad)))
        true2d = jnp.pad(true2d, ((0, 0), (0, lane_pad)))
    rows = (N + lane_pad) // _LANES
    pred3 = pred2d.reshape(B, rows, _LANES)
    true3 = true2d.reshape(B, rows, _LANES)

    tile_r = min(_MAX_TILE_ROWS, _round_up(rows, _SUBLANES))
    chunk_r = _CHUNK_ROWS if tile_r % _CHUNK_ROWS == 0 else tile_r
    kt_glob = pl.cdiv(rows, tile_r)                 # true number of row tiles
    kt_half = pl.cdiv(kt_glob, _NUM_CORE_SPLITS)    # row tiles per core split
    need_mask = (_NUM_CORE_SPLITS * kt_half * tile_r) != rows

    def in_index(b, c, k):
        # Clamp fully-out-of-range tiles onto the last valid tile; their
        # contribution is zeroed by the in-kernel row mask.
        return (b, jnp.minimum(c * kt_half + k, kt_glob - 1), 0)

    in_spec = pl.BlockSpec((1, tile_r, _LANES), in_index)
    acc_spec = pl.BlockSpec((1, _SUBLANES, _LANES), lambda b, c, k: (b, c, 0))
    acc_shape = jax.ShapeDtypeStruct(
        (B, _NUM_CORE_SPLITS * _SUBLANES, _LANES), jnp.float32)

    kernel = functools.partial(
        _tversky_sums_kernel, rows_total=rows, tile_r=tile_r, chunk_r=chunk_r,
        kt_half=kt_half, need_mask=need_mask)

    n_elems = B * rows * _LANES
    acc_bytes = 3 * B * _NUM_CORE_SPLITS * _SUBLANES * _LANES * 4
    cost = pl.CostEstimate(
        flops=4 * n_elems,           # 1 mul + 3 adds per element
        transcendentals=0,
        bytes_accessed=n_elems * (pred3.dtype.itemsize + true3.dtype.itemsize)
        + acc_bytes,
    )

    tp_acc, s1_acc, s2_acc = pl.pallas_call(
        kernel,
        out_shape=(acc_shape, acc_shape, acc_shape),
        grid_spec=pltpu.PrefetchScalarGridSpec(
            num_scalar_prefetch=0,
            grid=(B, _NUM_CORE_SPLITS, kt_half),
            in_specs=[in_spec, in_spec],
            out_specs=[acc_spec, acc_spec, acc_spec],
        ),
        compiler_params=pltpu.CompilerParams(
            dimension_semantics=("parallel", "parallel", "arbitrary"),
            vmem_limit_bytes=48 * 1024 * 1024,
        ),
        cost_estimate=cost,
    )(pred3, true3)

    # Tiny final cross-split/sublane/lane reduce (B * 2048 elems) in plain JAX.
    tp = jnp.sum(tp_acc, axis=(1, 2))
    s_true = jnp.sum(s1_acc, axis=(1, 2))
    s_pred = jnp.sum(s2_acc, axis=(1, 2))
    return tp, s_true, s_pred


@functools.partial(jax.jit, static_argnames=("alpha", "beta", "smooth"))
def tversky_loss(y_pred, y_true, alpha=0.3, beta=0.7, smooth=0.001):
    """Matches TverskyLoss.forward(y_pred, y_true) from the PyTorch module."""
    B = y_true.shape[0]
    m2 = y_pred.reshape(B, -1)  # m2 = y_pred.view(B, -1)
    m1 = y_true.reshape(B, -1)  # m1 = y_true.view(B, -1)

    tp, s_true, s_pred = _tversky_sums(m2, m1)
    fp = s_pred - tp  # sum(m2 * (1 - m1))
    fn = s_true - tp  # sum(m1 * (1 - m2))

    score = (tp + smooth) / (tp + alpha * fp + beta * fn + smooth)
    return 1.0 - jnp.sum(score) / B


def _reference(y_pred, y_true, alpha=0.3, beta=0.7, smooth=0.001):
    B = y_true.shape[0]
    m1 = y_true.reshape(B, -1).astype(jnp.float32)
    m2 = y_pred.reshape(B, -1).astype(jnp.float32)
    tp = jnp.sum(m1 * m2, axis=1)
    fp = jnp.sum(m2 * (1 - m1), axis=1)
    fn = jnp.sum(m1 * (1 - m2), axis=1)
    score = (tp + smooth) / (tp + alpha * fp + beta * fn + smooth)
    return 1.0 - jnp.sum(score) / B


if __name__ == "__main__":
    key = jax.random.PRNGKey(0)
    k1, k2 = jax.random.split(key)

    # NCHW inputs, like the PyTorch module would receive.
    B, C, H, W = 2, 4, 16, 16
    y_pred = jax.random.uniform(k1, (B, C, H, W), dtype=jnp.float32)  # "probabilities"
    y_true = (jax.random.uniform(k2, (B, C, H, W)) > 0.5).astype(jnp.float32)  # binary mask

    loss = tversky_loss(y_pred, y_true)
    jax.block_until_ready(loss)

    ref = _reference(y_pred, y_true)
    assert jnp.allclose(loss, ref, atol=1e-5, rtol=1e-4), (loss, ref)

    print("KERNEL_OK")
</pallas_src>

<mosaic_0001>
module attributes {stable_mosaic.version = 11 : i64} {
  func.func @_tversky_sums_kernel(%arg0: i32, %arg1: i32, %arg2: i32, %arg3: memref<1x8x128xf32, #tpu.memory_space<vmem>>, %arg4: memref<1x8x128xf32, #tpu.memory_space<vmem>>, %arg5: memref<1x8x128xf32, #tpu.memory_space<vmem>>, %arg6: memref<1x8x128xf32, #tpu.memory_space<vmem>>, %arg7: memref<1x8x128xf32, #tpu.memory_space<vmem>>) attributes {dimension_semantics = [#tpu.dimension_semantics<parallel>, #tpu.dimension_semantics<parallel>, #tpu.dimension_semantics<arbitrary>], iteration_bounds = array<i64: 2, 2, 1>, scalar_prefetch = 0 : i64, scratch_operands = 0 : i64, tpu.core_type = #tpu.core_type<tc>, window_params = [{transform_indices = @transform_0, window_bounds = array<i64: 1, 8, 128>}, {transform_indices = @transform_1, window_bounds = array<i64: 1, 8, 128>}, {transform_indices = @transform_2, window_bounds = array<i64: 1, 8, 128>}, {transform_indices = @transform_3, window_bounds = array<i64: 1, 8, 128>}, {transform_indices = @transform_4, window_bounds = array<i64: 1, 8, 128>}]} {
    %c0_i32 = arith.constant 0 : i32
    %0 = arith.cmpi eq, %arg2, %c0_i32 : i32
    %1 = arith.extui %0 : i1 to i32
    %c0_i32_0 = arith.constant 0 : i32
    %2 = arith.cmpi ne, %1, %c0_i32_0 : i32
    scf.if %2 {
      %cst_30 = arith.constant 0.000000e+00 : f32
      %44 = vector.broadcast %cst_30 : f32 to vector<1x8x128xf32>
      %c0_31 = arith.constant 0 : index
      %c0_32 = arith.constant 0 : index
      %c0_33 = arith.constant 0 : index
      %45 = vector.load %arg5[%c0_31, %c0_32, %c0_33] : memref<1x8x128xf32, #tpu.memory_space<vmem>>, vector<1x8x128xf32>
      tpu.vector_store %arg5[%c0_31, %c0_32, %c0_33], %44 {strides = array<i32>} : memref<1x8x128xf32, #tpu.memory_space<vmem>>, vector<1x8x128xf32>,
      %cst_34 = arith.constant 0.000000e+00 : f32
      %46 = vector.broadcast %cst_34 : f32 to vector<1x8x128xf32>
      %c0_35 = arith.constant 0 : index
      %c0_36 = arith.constant 0 : index
      %c0_37 = arith.constant 0 : index
      %47 = vector.load %arg6[%c0_35, %c0_36, %c0_37] : memref<1x8x128xf32, #tpu.memory_space<vmem>>, vector<1x8x128xf32>
      tpu.vector_store %arg6[%c0_35, %c0_36, %c0_37], %46 {strides = array<i32>} : memref<1x8x128xf32, #tpu.memory_space<vmem>>, vector<1x8x128xf32>,
      %cst_38 = arith.constant 0.000000e+00 : f32
      %48 = vector.broadcast %cst_38 : f32 to vector<1x8x128xf32>
      %c0_39 = arith.constant 0 : index
      %c0_40 = arith.constant 0 : index
      %c0_41 = arith.constant 0 : index
      %49 = vector.load %arg7[%c0_39, %c0_40, %c0_41] : memref<1x8x128xf32, #tpu.memory_space<vmem>>, vector<1x8x128xf32>
      tpu.vector_store %arg7[%c0_39, %c0_40, %c0_41], %48 {strides = array<i32>} : memref<1x8x128xf32, #tpu.memory_space<vmem>>, vector<1x8x128xf32>,
    } else {
    }
    %c1_i32 = arith.constant 1 : i32
    %3 = arith.muli %arg1, %c1_i32 : i32
    %4 = arith.addi %3, %arg2 : i32
    %c8_i32 = arith.constant 8 : i32
    %5 = arith.muli %4, %c8_i32 : i32
    %c8_i32_1 = arith.constant 8 : i32
    %6 = arith.subi %c8_i32_1, %5 : i32
    %7 = tpu.iota {dimensions = array<i32: 0>} : vector<8x128xi32>
    %c0 = arith.constant 0 : index
    %c0_2 = arith.constant 0 : index
    %c0_3 = arith.constant 0 : index
    %8 = vector.load %arg3[%c0, %c0_2, %c0_3] : memref<1x8x128xf32, #tpu.memory_space<vmem>>, vector<1x8x128xf32>
    %9 = vector.shape_cast %8 : vector<1x8x128xf32> to vector<8x128xf32>
    %c0_4 = arith.constant 0 : index
    %c0_5 = arith.constant 0 : index
    %c0_6 = arith.constant 0 : index
    %10 = vector.load %arg4[%c0_4, %c0_5, %c0_6] : memref<1x8x128xf32, #tpu.memory_space<vmem>>, vector<1x8x128xf32>
    %11 = vector.shape_cast %10 : vector<1x8x128xf32> to vector<8x128xf32>
    %c0_i32_7 = arith.constant 0 : i32
    %12 = arith.subi %6, %c0_i32_7 : i32
    %13 = vector.broadcast %12 : i32 to vector<8x128xi32>
    %14 = arith.cmpi slt, %7, %13 : vector<8x128xi32>
    %cst = arith.constant 0.000000e+00 : f32
    %15 = vector.broadcast %cst : f32 to vector<8x128xf32>
    %16 = arith.select %14, %11, %15 : vector<8x128xi1>, vector<8x128xf32>
    %cst_8 = arith.constant 0.000000e+00 : f32
    %17 = vector.broadcast %cst_8 : f32 to vector<8x128xf32>
    %18 = arith.select %14, %9, %17 : vector<8x128xi1>, vector<8x128xf32>
    %c0_9 = arith.constant 0 : index
    %c0_10 = arith.constant 0 : index
    %c0_11 = arith.constant 0 : index
    %19 = vector.load %arg5[%c0_9, %c0_10, %c0_11] : memref<1x8x128xf32, #tpu.memory_space<vmem>>, vector<1x8x128xf32>
    %20 = vector.shape_cast %19 : vector<1x8x128xf32> to vector<8x128xf32>
    %21 = arith.mulf %16, %18 : vector<8x128xf32>
    %22 = vector.shape_cast %21 : vector<8x128xf32> to vector<1x8x128xf32>
    %cst_12 = arith.constant dense<0.000000e+00> : vector<8x128xf32>
    %23 = vector.multi_reduction <add>, %22, %cst_12 [0] : vector<1x8x128xf32> to vector<8x128xf32>
    %24 = arith.addf %20, %23 : vector<8x128xf32>
    %c0_13 = arith.constant 0 : index
    %c0_14 = arith.constant 0 : index
    %c0_15 = arith.constant 0 : index
    %25 = vector.load %arg5[%c0_13, %c0_14, %c0_15] : memref<1x8x128xf32, #tpu.memory_space<vmem>>, vector<1x8x128xf32>
    %26 = vector.shape_cast %25 : vector<1x8x128xf32> to vector<8x128xf32>
    %27 = vector.shape_cast %24 : vector<8x128xf32> to vector<1x8x128xf32>
    tpu.vector_store %arg5[%c0_13, %c0_14, %c0_15], %27 {strides = array<i32>} : memref<1x8x128xf32, #tpu.memory_space<vmem>>, vector<1x8x128xf32>,
    %c0_16 = arith.constant 0 : index
    %c0_17 = arith.constant 0 : index
    %c0_18 = arith.constant 0 : index
    %28 = vector.load %arg6[%c0_16, %c0_17, %c0_18] : memref<1x8x128xf32, #tpu.memory_space<vmem>>, vector<1x8x128xf32>
    %29 = vector.shape_cast %28 : vector<1x8x128xf32> to vector<8x128xf32>
    %30 = vector.shape_cast %16 : vector<8x128xf32> to vector<1x8x128xf32>
    %cst_19 = arith.constant dense<0.000000e+00> : vector<8x128xf32>
    %31 = vector.multi_reduction <add>, %30, %cst_19 [0] : vector<1x8x128xf32> to vector<8x128xf32>
    %32 = arith.addf %29, %31 : vector<8x128xf32>
    %c0_20 = arith.constant 0 : index
    %c0_21 = arith.constant 0 : index
    %c0_22 = arith.constant 0 : index
    %33 = vector.load %arg6[%c0_20, %c0_21, %c0_22] : memref<1x8x128xf32, #tpu.memory_space<vmem>>, vector<1x8x128xf32>
    %34 = vector.shape_cast %33 : vector<1x8x128xf32> to vector<8x128xf32>
    %35 = vector.shape_cast %32 : vector<8x128xf32> to vector<1x8x128xf32>
    tpu.vector_store %arg6[%c0_20, %c0_21, %c0_22], %35 {strides = array<i32>} : memref<1x8x128xf32, #tpu.memory_space<vmem>>, vector<1x8x128xf32>,
    %c0_23 = arith.constant 0 : index
    %c0_24 = arith.constant 0 : index
    %c0_25 = arith.constant 0 : index
    %36 = vector.load %arg7[%c0_23, %c0_24, %c0_25] : memref<1x8x128xf32, #tpu.memory_space<vmem>>, vector<1x8x128xf32>
    %37 = vector.shape_cast %36 : vector<1x8x128xf32> to vector<8x128xf32>
    %38 = vector.shape_cast %18 : vector<8x128xf32> to vector<1x8x128xf32>
    %cst_26 = arith.constant dense<0.000000e+00> : vector<8x128xf32>
    %39 = vector.multi_reduction <add>, %38, %cst_26 [0] : vector<1x8x128xf32> to vector<8x128xf32>
    %40 = arith.addf %37, %39 : vector<8x128xf32>
    %c0_27 = arith.constant 0 : index
    %c0_28 = arith.constant 0 : index
    %c0_29 = arith.constant 0 : index
    %41 = vector.load %arg7[%c0_27, %c0_28, %c0_29] : memref<1x8x128xf32, #tpu.memory_space<vmem>>, vector<1x8x128xf32>
    %42 = vector.shape_cast %41 : vector<1x8x128xf32> to vector<8x128xf32>
    %43 = vector.shape_cast %40 : vector<8x128xf32> to vector<1x8x128xf32>
    tpu.vector_store %arg7[%c0_27, %c0_28, %c0_29], %43 {strides = array<i32>} : memref<1x8x128xf32, #tpu.memory_space<vmem>>, vector<1x8x128xf32>,
    return
  }
  func.func @transform_0(%arg0: i32, %arg1: i32, %arg2: i32) -> (i32, i32, i32) {
    %c1_i32 = arith.constant 1 : i32
    %0 = arith.muli %arg1, %c1_i32 : i32
    %1 = arith.addi %0, %arg2 : i32
    %c0_i32 = arith.constant 0 : i32
    %2 = arith.minsi %1, %c0_i32 : i32
    %c0_i32_0 = arith.constant 0 : i32
    %c0_i32_1 = arith.constant 0 : i32
    return %arg0, %2, %c0_i32_0 : i32, i32, i32
  }
  func.func @transform_1(%arg0: i32, %arg1: i32, %arg2: i32) -> (i32, i32, i32) {
    %c1_i32 = arith.constant 1 : i32
    %0 = arith.muli %arg1, %c1_i32 : i32
    %1 = arith.addi %0, %arg2 : i32
    %c0_i32 = arith.constant 0 : i32
    %2 = arith.minsi %1, %c0_i32 : i32
    %c0_i32_0 = arith.constant 0 : i32
    %c0_i32_1 = arith.constant 0 : i32
    return %arg0, %2, %c0_i32_0 : i32, i32, i32
  }
  func.func @transform_2(%arg0: i32, %arg1: i32, %arg2: i32) -> (i32, i32, i32) {
    %c0_i32 = arith.constant 0 : i32
    %c0_i32_0 = arith.constant 0 : i32
    return %arg0, %arg1, %c0_i32 : i32, i32, i32
  }
  func.func @transform_3(%arg0: i32, %arg1: i32, %arg2: i32) -> (i32, i32, i32) {
    %c0_i32 = arith.constant 0 : i32
    %c0_i32_0 = arith.constant 0 : i32
    return %arg0, %arg1, %c0_i32 : i32, i32, i32
  }
  func.func @transform_4(%arg0: i32, %arg1: i32, %arg2: i32) -> (i32, i32, i32) {
    %c0_i32 = arith.constant 0 : i32
    %c0_i32_0 = arith.constant 0 : i32
    return %arg0, %arg1, %c0_i32 : i32, i32, i32
  }
}

</mosaic_0001>

<bundles_post_ra>
// kernel: tversky_loss.1
= control target key start
LH: loop header
LB: loop body
LE: loop exit
PB: predicated region body
PF: predicated region fallthrough
CT: control target
= control target key end

     0   :  { %s698_s15 = smov 0   ;;  %s700_s16 = smov 0   ;;  %s765_s0 = inlined_call_operand.vmem [shape: f32[2,8,128], index: 0, kind: input, shape index: {}]   ;;  %s766_s1 = inlined_call_operand.vmem [shape: f32[2,8,128], index: 1, kind: input, shape index: {}]   ;;  %s767_s2 = inlined_call_operand.vmem [shape: f32[2,16,128], index: 2, kind: output, shape index: {0}]   ;;  %s768_s3 = inlined_call_operand.vmem [shape: f32[2,16,128], index: 3, kind: output, shape index: {1}]   ;;  %s769_s4 = inlined_call_operand.vmem [shape: f32[2,16,128], index: 4, kind: output, shape index: {2}]  }
   0x1   :  { %s702_s17 = smov 0   ;;  %s704_s18 = smov 0  }
   0x2   :  { %s706_s19 = smov 0  }
   0x3 LB: > { %s30_s20 = sadd.s32 1, %s663_s17  ;;  %s34_s21 = sadd.s32 1, %s667_s18  ;;  %s671_s19 = sphi %s706_s19, %s15_s19   ;;  %s667_s18 = sphi %s704_s18, %s773_s18   ;;  %s663_s17 = sphi %s702_s17, %s772_s17   ;;  %s659_s16 = sphi %s700_s16, %s771_s16   ;;  %s655_s15 = sphi %s698_s15, %s770_s15  }
   0x4   : > { %p32_p0 = scmp.ge.s32.totalorder %s30_s20, 2  ;;  %p574_p1 = scmp.ge.s32.totalorder %s671_s19, 1 }
   0x5   : > { %p234_p2 = scmp.lt.s32.totalorder %s671_s19, 5 }
   0x6   : > { %s775_s20 = smov (%p32_p0, %s30_s20), 0  ;;  %s777_s21 = smov (!%p32_p0, %s34_s21), %s667_s18 }
   0x7   : > { %p235_p3 = pnand %p574_p1, %p234_p2  ;;  %p36_p4 = scmp.ge.s32.totalorder %s777_s21, 2 }
   0x8   : > { %p295_p5 = scmp.lt.s32.totalorder (!%p235_p3), %s655_s15, 0  ;;  %p297_p6 = scmp.lt.s32.totalorder (!%p235_p3), %s659_s16, 1  ;;  %v354_v0 = vlaneseq (!%p235_p3) }
   0x9   : > { %s779_s21 = smov (%p36_p4, %s777_s21), 0  ;;  %238 = sbr.rel (%p235_p3) target bundleno = 29 (0x1d), region = 28 }
   0xa   : > { %p322_p7 = scmp.lt.s32.totalorder (!%p235_p3), %s655_s15, 1  ;;  %s589_s27 = sshll.u32 (!%p235_p3), %s655_s15, 3  ;;  %v355_v1 = vshrl.u32 (!%p235_p3), %v354_v0, 7 }
   0xb   : > { %s353_s10 = ssub.s32 (!%p235_p3), 8, %s589_s27 }
   0xc   : > { %v358_v4 = vstv (!%p235_p3), %s353_s10 }
   0xd   : > { %vm359_vm0 = vcmp.lt.s32.totalorder (!%p235_p3), %v355_v1, %v358_v4 }
  0x10   : > { %s296_s22 = scalar_select %p295_p5, %s655_s15, 0 }
  0x11   : > { %s781_s16 = smov (!%p297_p6, %s659_s16), 1 }
  0x12   : > { %s783_s22 = smov (!%p295_p5, %s296_s22), 0  ;;  %s583_s25 = sshll.u32 %s781_s16, 1 }
  0x13   : > { %s323_s23 = scalar_select %p322_p7, %s655_s15, 1 }
  0x14   : > { %s301_s24 = sadd.s32 %s783_s22, %s781_s16 }
  0x15   : > { %s578_s26 = sshll.u32 %s301_s24, 3  ;;  %s325_s28 = sadd.s32 %s583_s25, %s323_s23 }
  0x16   : > { %s303_s5 = scalar_lea.vmem %s765_s0, %s578_s26  ;;  %s316_s8 = scalar_lea.vmem %s766_s1, %s578_s26 }
  0x17   : > { %s584_s9 = sshll.u32 %s325_s28, 3  ;;  %v356_v2 = vld [vmem:[%s303_s5] sm:$0xff] }
  0x18   : > { %v357_v3 = vld [vmem:[%s316_s8] sm:$0xff]  ;;  %s335_s13 = scalar_lea.vmem %s768_s3, %s584_s9  ;;  %s343_s16 = scalar_lea.vmem %s769_s4, %s584_s9  ;;  %v361_v6 = vsel %vm359_vm0, %v356_v2, 0.0 }
  0x19   : > { %v360_v5 = vsel %vm359_vm0, %v357_v3, 0.0  ;;  %s327_s24 = scalar_lea.vmem %s767_s2, %s584_s9  ;;  %374 = vst [vmem:[%s343_s16] sm:$0xff] %v361_v6 }
  0x1a   : > { %v363_v7 = vmul.f32 %v361_v6, %v360_v5  ;;  %370 = vst [vmem:[%s335_s13] sm:$0xff] %v360_v5 }
  0x1c   : > { %366 = vst [vmem:[%s327_s24] sm:$0xff] %v363_v7 }
  0x1d PF: > { %s15_s19 = sadd.s32 1, %s671_s19   ;;  %s770_s15 = smov %s663_s17 }
  0x1e   : > { %p12_p8 = scmp.ge.s32.totalorder %s15_s19, 6   ;;  %s771_s16 = smov %s667_s18 }
  0x1f   : > { %s772_s17 = smov %s775_s20  ;;  %s773_s18 = smov %s779_s21 }
  0x20   :  { %14 = sbr.rel (!%p12_p8) target bundleno = 3 (0x3), region = 89 }

</bundles_post_ra>
